<compile_context>
chip_gen: v7x
topology: tpu7x:2x2x1
jax: 0.10.0
libtpu: 0.0.40
codegen_flags: <defaults>
</compile_context>

<pallas_src>
import jax
import jax.numpy as jnp
from jax import lax
from jax.experimental import pallas as pl
from jax.experimental.pallas import tpu as pltpu


# ----------------------------------------------------------------------------
# Kernel: one image's fused conv as a single MXU matmul.
#   p_ref : (1, K, HW)    im2col patches, K = 9*Cin, rows ordered (cin, kh, kw)
#   w_ref : (Cout, K)     fused weights (Cout = 4*out_c = 128)
#   b_ref : (Cout, 1)     fused biases
#   o_ref : (1, Cout, HW) NCHW-flat output block (128 x 256 -> lane-dense)
# ----------------------------------------------------------------------------
def icep_conv_kernel(p_ref, w_ref, b_ref, o_ref):
    acc = jnp.dot(w_ref[...], p_ref[0], preferred_element_type=jnp.float32)
    o_ref[0] = acc + b_ref[...]          # bias broadcast over the HW lanes


# ----------------------------------------------------------------------------
# Wrapper: parameter folding, im2col, layout plumbing (all tiny / fused by XLA).
# ----------------------------------------------------------------------------
def icep_block(x_nchw, weights, biases):
    """weights: list of 4 arrays (out_c, in_c, 3, 3); biases: list of 4 (out_c,)."""
    N, cin, H, W = x_nchw.shape
    HW = H * W
    w_cat = jnp.concatenate(weights, axis=0)          # (4*out_c, in_c, 3, 3)
    b_cat = jnp.concatenate(biases, axis=0)           # (4*out_c,)
    cout = w_cat.shape[0]
    K = 9 * cin

    x = x_nchw.astype(jnp.float32)
    # im2col in the wrapper: pad + 9 shifted slices.  Row order of the K axis
    # is (cin, kh, kw) by construction, matching w_cat.reshape(cout, cin*9).
    xp = jnp.pad(x, ((0, 0), (0, 0), (1, 1), (1, 1)))
    taps = [xp[:, :, dy:dy + H, dx:dx + W] for dy in range(3) for dx in range(3)]
    patches = jnp.stack(taps, axis=2).reshape(N, K, HW)      # (N, 9*Cin, H*W)

    w_mat = w_cat.reshape(cout, K).astype(jnp.float32)        # (Cout, 9*Cin)
    b_col = b_cat.reshape(cout, 1).astype(jnp.float32)        # (Cout, 1)

    out_flat = pl.pallas_call(
        icep_conv_kernel,
        out_shape=jax.ShapeDtypeStruct((N, cout, HW), jnp.float32),
        grid=(N,),
        in_specs=[
            pl.BlockSpec((1, K, HW), lambda n: (n, 0, 0)),
            pl.BlockSpec((cout, K), lambda n: (0, 0)),    # fetched once
            pl.BlockSpec((cout, 1), lambda n: (0, 0)),    # fetched once
        ],
        out_specs=pl.BlockSpec((1, cout, HW), lambda n: (n, 0, 0)),
        compiler_params=pltpu.CompilerParams(dimension_semantics=("parallel",)),
    )(patches, w_mat, b_col)

    # Output is already in NCHW order: only a free reshape remains.
    return out_flat.reshape(N, cout, H, W)


# ----------------------------------------------------------------------------
# Pure-JAX reference (literal translation of the PyTorch module).
# ----------------------------------------------------------------------------
def reference(x_nchw, weights, biases):
    x = x_nchw.astype(jnp.float32)
    outs = []
    for w, b in zip(weights, biases):
        y = lax.conv_general_dilated(
            x, w.astype(jnp.float32), window_strides=(1, 1),
            padding=((1, 1), (1, 1)),
            dimension_numbers=("NCHW", "OIHW", "NCHW"))
        outs.append(y + b.reshape(1, -1, 1, 1))
    return jnp.concatenate(outs, axis=1)                 # channel concat


def make_params(key, in_c=3, out_c=32):
    ks = jax.random.split(key, 8)
    weights = [0.1 * jax.random.normal(ks[i], (out_c, in_c, 3, 3), jnp.float32)
               for i in range(4)]
    biases = [0.01 * jax.random.normal(ks[4 + i], (out_c,), jnp.float32)
              for i in range(4)]
    return weights, biases


if __name__ == "__main__":
    key = jax.random.PRNGKey(0)
    kx, kp = jax.random.split(key)

    # Shapes implied by the module: in_c=3, out_c=32, small batch & spatial.
    N, C, H, W = 2, 3, 16, 16
    x = jax.random.normal(kx, (N, C, H, W), jnp.float32)
    weights, biases = make_params(kp, in_c=C, out_c=32)

    out = jax.jit(icep_block)(x, weights, biases)
    out = jax.block_until_ready(out)
    assert out.shape == (N, 4 * 32, H, W), out.shape

    ref = reference(x, weights, biases)
    err = float(jnp.max(jnp.abs(out - ref)))
    assert jnp.allclose(out, ref, rtol=1e-4, atol=1e-4), err

    print("KERNEL_OK")
</pallas_src>

<mosaic_0001>
module attributes {stable_mosaic.version = 11 : i64} {
  func.func @icep_conv_kernel(%arg0: i32, %arg1: memref<1x27x256xf32, #tpu.memory_space<vmem>>, %arg2: memref<128x27xf32, #tpu.memory_space<vmem>>, %arg3: memref<128x1xf32, #tpu.memory_space<vmem>>, %arg4: memref<1x128x256xf32, #tpu.memory_space<vmem>>) attributes {dimension_semantics = [#tpu.dimension_semantics<parallel>], iteration_bounds = array<i64: 2>, scalar_prefetch = 0 : i64, scratch_operands = 0 : i64, tpu.core_type = #tpu.core_type<tc>, window_params = [{transform_indices = @transform_0, window_bounds = array<i64: 1, 27, 256>}, {pipeline_mode = #tpu.pipeline_mode<synchronous>, transform_indices = @transform_1, window_bounds = array<i64: 128, 27>}, {pipeline_mode = #tpu.pipeline_mode<synchronous>, transform_indices = @transform_2, window_bounds = array<i64: 128, 1>}, {transform_indices = @transform_3, window_bounds = array<i64: 1, 128, 256>}]} {
    %c0 = arith.constant 0 : index
    %c0_0 = arith.constant 0 : index
    %0 = vector.load %arg2[%c0, %c0_0] : memref<128x27xf32, #tpu.memory_space<vmem>>, vector<128x27xf32>
    %c0_1 = arith.constant 0 : index
    %c0_2 = arith.constant 0 : index
    %c0_3 = arith.constant 0 : index
    %1 = vector.load %arg1[%c0_1, %c0_2, %c0_3] : memref<1x27x256xf32, #tpu.memory_space<vmem>>, vector<1x27x256xf32>
    %2 = vector.shape_cast %1 : vector<1x27x256xf32> to vector<27x256xf32>
    %cst = arith.constant dense<0.000000e+00> : vector<128x256xf32>
    %3 = tpu.matmul %0, %2, %cst {dimension_numbers = #tpu.dot_dimension_numbers<[1], [0], [0], [1], [0, 0, 1, 1], [], []>} : vector<128x27xf32>, vector<27x256xf32>, vector<128x256xf32> -> vector<128x256xf32>
    %c0_4 = arith.constant 0 : index
    %c0_5 = arith.constant 0 : index
    %4 = vector.load %arg3[%c0_4, %c0_5] : memref<128x1xf32, #tpu.memory_space<vmem>>, vector<128x1xf32>
    %5 = vector.broadcast %4 : vector<128x1xf32> to vector<128x256xf32>
    %6 = arith.addf %3, %5 : vector<128x256xf32>
    %c0_6 = arith.constant 0 : index
    %c0_7 = arith.constant 0 : index
    %c0_8 = arith.constant 0 : index
    %7 = vector.load %arg4[%c0_6, %c0_7, %c0_8] : memref<1x128x256xf32, #tpu.memory_space<vmem>>, vector<1x128x256xf32>
    %8 = vector.shape_cast %7 : vector<1x128x256xf32> to vector<128x256xf32>
    %9 = vector.shape_cast %6 : vector<128x256xf32> to vector<1x128x256xf32>
    tpu.vector_store %arg4[%c0_6, %c0_7, %c0_8], %9 {strides = array<i32>} : memref<1x128x256xf32, #tpu.memory_space<vmem>>, vector<1x128x256xf32>,
    return
  }
  func.func @transform_0(%arg0: i32) -> (i32, i32, i32) {
    %c0_i32 = arith.constant 0 : i32
    %c0_i32_0 = arith.constant 0 : i32
    %c0_i32_1 = arith.constant 0 : i32
    return %arg0, %c0_i32, %c0_i32_0 : i32, i32, i32
  }
  func.func @transform_1(%arg0: i32) -> (i32, i32) {
    %c0_i32 = arith.constant 0 : i32
    %c0_i32_0 = arith.constant 0 : i32
    %c0_i32_1 = arith.constant 0 : i32
    return %c0_i32, %c0_i32_0 : i32, i32
  }
  func.func @transform_2(%arg0: i32) -> (i32, i32) {
    %c0_i32 = arith.constant 0 : i32
    %c0_i32_0 = arith.constant 0 : i32
    %c0_i32_1 = arith.constant 0 : i32
    return %c0_i32, %c0_i32_0 : i32, i32
  }
  func.func @transform_3(%arg0: i32) -> (i32, i32, i32) {
    %c0_i32 = arith.constant 0 : i32
    %c0_i32_0 = arith.constant 0 : i32
    %c0_i32_1 = arith.constant 0 : i32
    return %arg0, %c0_i32, %c0_i32_0 : i32, i32, i32
  }
}

</mosaic_0001>

<bundles_post_ra>
// kernel: icep_block.1
= control target key start
LH: loop header
LB: loop body
LE: loop exit
PB: predicated region body
PF: predicated region fallthrough
CT: control target
= control target key end

     0   :  { %s684_s12 = smov 0   ;;  %s895_s0 = inlined_call_operand.vmem [shape: f32[2,27,256], index: 0, kind: input, shape index: {}]   ;;  %s896_s1 = inlined_call_operand.vmem [shape: f32[128,27], index: 1, kind: input, shape index: {}]   ;;  %s897_s2 = inlined_call_operand.vmem [shape: f32[128,1], index: 2, kind: input, shape index: {}]   ;;  %s898_s3 = inlined_call_operand.vmem [shape: f32[2,128,256], index: 3, kind: output, shape index: {}]  }
   0x1 LB: > { %s595_s13 = sadd.s32 4294967295, %s659_s12   ;;  %p599_p0 = scmp.ge.s32.totalorder %s659_s12, 1  ;;  %s659_s12 = sphi %s684_s12, %s13_s12  }
   0x2   : > { %p137_p1 = scmp.lt.s32.totalorder %s659_s12, 3 }
   0x4   : > { %p138_p2 = pnand %p599_p0, %p137_p1 }
   0x5   : > { %p161_p3 = scmp.lt.s32.totalorder (!%p138_p2), %s595_s13, 1  ;;  %v661_v0 = vmov (!%p138_p2), 0.0   ;;  %v662_v1 = vmov (!%p138_p2), 0   ;;  %vm340_vm0 = vcmask (!%p138_p2), 1042432   ;;  %vm663_vm1 = vmmov (!%p138_p2), 1   ;;  %v197_v14 = vld [vmem:[%s897_s2 + $0x10] sm:$0xff] (!%p138_p2) }
   0x6   : > { %141 = sbr.rel (%p138_p2) target bundleno = 271 (0x10f), region = 32  ;;  %411 = vmatprep.mubr.f32.mxu0 (!%p138_p2), %v661_v0  ;;  %459 = vmatprep.mubr.f32.mxu1 (!%p138_p2), %v661_v0  ;;  %vm700_vm2 = vmpackc.low (!%p138_p2), %vm340_vm0, %vm663_vm1  ;;  %v195_v15 = vld [vmem:[%s897_s2] sm:$0xff] (!%p138_p2)  ;;  %v198_v17 = vld [vmem:[%s897_s2 + $0x18] sm:$0xff] (!%p138_p2)  ;;  %vm291_vm3 = vcmask (!%p138_p2), 220160  }
   0x7   : > { %652 = vset.pattern.permute.xlu1 (!%p138_p2), %v662_v1  ;;  %651 = vset.pattern.permute.xlu0 (!%p138_p2), %v662_v1  ;;  %v196_v18 = vld [vmem:[%s897_s2 + $0x8] sm:$0xff] (!%p138_p2)  ;;  %v171_v19 = vld [vmem:[%s896_s1] sm:$0xff] (!%p138_p2)  ;;  %v202_v25 = vld [vmem:[%s897_s2 + $0x38] sm:$0xff] (!%p138_p2) }
   0x8   : > { %223 = vperm.xlu1 (!%p138_p2), %652, %v197_v14   ;;  %213 = vperm.xlu0 (!%p138_p2), %651, %v195_v15   ;;  %v179_v20 = vld [vmem:[%s896_s1 + $0x40] sm:$0xff] (!%p138_p2)  ;;  %v200_v21 = vld [vmem:[%s897_s2 + $0x28] sm:$0xff] (!%p138_p2)  ;;  %v201_v26 = vld [vmem:[%s897_s2 + $0x30] sm:$0xff] (!%p138_p2) }
   0x9   : > { %v199_v22 = vld [vmem:[%s897_s2 + $0x20] sm:$0xff] (!%p138_p2)  ;;  %v172_v23 = vld [vmem:[%s896_s1 + $0x8] sm:$0xff] (!%p138_p2)  ;;  %v173_v27 = vld [vmem:[%s896_s1 + $0x10] sm:$0xff] (!%p138_p2) }
   0xa   : > { %v180_v24 = vld [vmem:[%s896_s1 + $0x48] sm:$0xff] (!%p138_p2)  ;;  %v181_v28 = vld [vmem:[%s896_s1 + $0x50] sm:$0xff] (!%p138_p2)  ;;  %v203_v30 = vld [vmem:[%s897_s2 + $0x40] sm:$0xff] (!%p138_p2) }
   0xb   : > { %v204_v29 = vld [vmem:[%s897_s2 + $0x48] sm:$0xff] (!%p138_p2)  ;;  %v174_v31 = vld [vmem:[%s896_s1 + $0x18] sm:$0xff] (!%p138_p2)  ;;  %v205_v34 = vld [vmem:[%s897_s2 + $0x50] sm:$0xff] (!%p138_p2) }
   0xc   : > { %228 = vperm.xlu1 (!%p138_p2), %652, %v198_v17   ;;  %218 = vperm.xlu0 (!%p138_p2), %651, %v196_v18   ;;  %v182_v32 = vld [vmem:[%s896_s1 + $0x58] sm:$0xff] (!%p138_p2)  ;;  %v175_v35 = vld [vmem:[%s896_s1 + $0x20] sm:$0xff] (!%p138_p2)  ;;  %v208_v37 = vld [vmem:[%s897_s2 + $0x68] sm:$0xff] (!%p138_p2) }
   0xd   : > { %s902_s13 = smov (!%p161_p3, %s595_s13), 1  ;;  %v206_v33 = vld [vmem:[%s897_s2 + $0x58] sm:$0xff]  ;;  %v183_v36 = vld [vmem:[%s896_s1 + $0x60] sm:$0xff]  ;;  %v176_v39 = vld [vmem:[%s896_s1 + $0x28] sm:$0xff] }
   0xe   : > { %s624_s14 = sshll.u32 %s902_s13, 6  ;;  %v207_v38 = vld [vmem:[%s897_s2 + $0x60] sm:$0xff]  ;;  %v184_v40 = vld [vmem:[%s896_s1 + $0x68] sm:$0xff]  ;;  %v210_v41 = vld [vmem:[%s897_s2 + $0x78] sm:$0xff]  ;;  %s625_s5 = sshll.u32 %s902_s13, 8 }
   0xf   : > { %s165_s17 = scalar_lea.vmem %s895_s0, %s624_s14  ;;  %v209_v42 = vld [vmem:[%s897_s2 + $0x70] sm:$0xff]  ;;  %v178_v45 = vld [vmem:[%s896_s1 + $0x38] sm:$0xff]  ;;  %s850_s8 = scalar_lea.vmem %s898_s3, %s625_s5 }
  0x10   : > { %v188_v2 = vld [vmem:[%s165_s17 + $0x8] sm:$0xff]  ;;  %v190_v3 = vld [vmem:[%s165_s17 + $0x18] sm:$0xff]  ;;  %v187_v4 = vld [vmem:[%s165_s17] sm:$0xff]  ;;  %238 = vperm.xlu1 %652, %v200_v21   ;;  %233 = vperm.xlu0 %651, %v199_v22  }
  0x11   : > { %v626_v5 = vpack.c.bf16 %v190_v3, %v188_v2  ;;  %v189_v6 = vld [vmem:[%s165_s17 + $0x10] sm:$0xff]  ;;  %v192_v7 = vld [vmem:[%s165_s17 + $0x28] sm:$0xff]  ;;  %v194_v8 = vld [vmem:[%s165_s17 + $0x38] sm:$0x7] }
  0x12   : > { %v628_v9 = vpack.c.bf16 %v189_v6, %v187_v4  ;;  %v630_v10 = vpack.c.bf16 %v194_v8, %v192_v7  ;;  %v191_v12 = vld [vmem:[%s165_s17 + $0x20] sm:$0xff]  ;;  %v193_v13 = vld [vmem:[%s165_s17 + $0x30] sm:$0x7]  ;;  %v186_v46 = vld [vmem:[%s896_s1 + $0x78] sm:$0xff] }
  0x13   : > { %627 = vmatprep.subr.bf16.mxu0 %v626_v5  ;;  %636 = vmatprep.subr.bf16.mxu1 %v626_v5  ;;  %v633_v16 = vpack.c.bf16 %v193_v13, %v191_v12  ;;  %v177_v43 = vld [vmem:[%s896_s1 + $0x30] sm:$0xff] }
  0x14   : > { %629 = vmatpush1.bf16.msra.mxu0 %v628_v9  ;;  %638 = vmatpush1.bf16.msra.mxu1 %v628_v9  ;;  %v185_v44 = vld [vmem:[%s896_s1 + $0x70] sm:$0xff] }
  0x15   : > { %632 = vmatprep.subr.msk.bf16.mxu0 %vm700_vm2, %v630_v10  ;;  %637 = vmatprep.subr.msk.bf16.mxu1 %vm700_vm2, %v630_v10 }
  0x16   : > { %248 = vperm.xlu1 %652, %v202_v25   ;;  %243 = vperm.xlu0 %651, %v201_v26  }
  0x18   : > { %635 = vmatpush1.bf16.msk.msra.mxu0 %vm700_vm2, %v633_v16  ;;  %639 = vmatpush1.bf16.msk.msra.mxu1 %vm700_vm2, %v633_v16 }
  0x1a   : > { %258 = vperm.xlu1 %652, %v204_v29   ;;  %253 = vperm.xlu0 %651, %v203_v30  }
  0x1b   : > { %606 = vmatmul.mubr.msk.f32.vlgmr.msra.gmra.mrb[0].mxu0 %vm291_vm3, %v171_v19  ;;  %614 = vmatmul.mubr.msk.f32.vlgmr.msra.gmra.mrb[0].mxu1 %vm291_vm3, %v179_v20 }
  0x1c   : > { %417 = vmatprep.mubr.f32.mxu0 %v661_v0  ;;  %465 = vmatprep.mubr.f32.mxu1 %v661_v0 }
  0x1e   : > { %268 = vperm.xlu1 %652, %v206_v33   ;;  %263 = vperm.xlu0 %651, %v205_v34  }
  0x1f   : > { %607 = vmatmul.mubr.msk.f32.gmra.mrb[2].mxu0 %vm291_vm3, %v172_v23  ;;  %615 = vmatmul.mubr.msk.f32.gmra.mrb[2].mxu1 %vm291_vm3, %v180_v24 }
  0x20   : > { %423 = vmatprep.mubr.f32.mxu0 %v661_v0  ;;  %471 = vmatprep.mubr.f32.mxu1 %v661_v0 }
  0x22   : > { %278 = vperm.xlu1 %652, %v208_v37   ;;  %273 = vperm.xlu0 %651, %v207_v38  }
  0x23   : > { %608 = vmatmul.mubr.msk.f32.gmra.mrb[4].mxu0 %vm291_vm3, %v173_v27  ;;  %616 = vmatmul.mubr.msk.f32.gmra.mrb[4].mxu1 %vm291_vm3, %v181_v28 }
  0x24   : > { %429 = vmatprep.mubr.f32.mxu0 %v661_v0  ;;  %477 = vmatprep.mubr.f32.mxu1 %v661_v0 }
  0x26   : > { %288 = vperm.xlu1 %652, %v210_v41   ;;  %283 = vperm.xlu0 %651, %v209_v42  }
  0x27   : > { %609 = vmatmul.mubr.msk.f32.gmra.mrb[6].mxu0 %vm291_vm3, %v174_v31  ;;  %617 = vmatmul.mubr.msk.f32.gmra.mrb[6].mxu1 %vm291_vm3, %v182_v32 }
  0x28   : > { %435 = vmatprep.mubr.f32.mxu0 %v661_v0  ;;  %483 = vmatprep.mubr.f32.mxu1 %v661_v0 }
  0x2b   : > { %610 = vmatmul.mubr.msk.f32.gmra.mrb[8].mxu0 %vm291_vm3, %v175_v35  ;;  %618 = vmatmul.mubr.msk.f32.gmra.mrb[8].mxu1 %vm291_vm3, %v183_v36 }
  0x2c   : > { %441 = vmatprep.mubr.f32.mxu0 %v661_v0  ;;  %489 = vmatprep.mubr.f32.mxu1 %v661_v0 }
  0x2f   : > { %611 = vmatmul.mubr.msk.f32.gmra.mrb[10].mxu0 %vm291_vm3, %v176_v39  ;;  %619 = vmatmul.mubr.msk.f32.gmra.mrb[10].mxu1 %vm291_vm3, %v184_v40 }
  0x30   : > { %447 = vmatprep.mubr.f32.mxu0 %v661_v0  ;;  %495 = vmatprep.mubr.f32.mxu1 %v661_v0 }
  0x33   : > { %612 = vmatmul.mubr.msk.f32.gmra.mrb[12].mxu0 %vm291_vm3, %v177_v43  ;;  %620 = vmatmul.mubr.msk.f32.gmra.mrb[12].mxu1 %vm291_vm3, %v185_v44 }
  0x34   : > { %453 = vmatprep.mubr.f32.mxu0 %v661_v0  ;;  %501 = vmatprep.mubr.f32.mxu1 %v661_v0 }
  0x37   : > { %613 = vmatmul.mubr.msk.f32.gmra.mrb[14].mxu0 %vm291_vm3, %v178_v45  ;;  %621 = vmatmul.mubr.msk.f32.gmra.mrb[14].mxu1 %vm291_vm3, %v186_v46 }
  0x87   : > { %v214_v47 = vpop.permute.xlu0 %213  ;;  %v224_v48 = vpop.permute.xlu1 %223 }
  0x8b   : > { %v219_v49 = vpop.permute.xlu0 %218  ;;  %v229_v50 = vpop.permute.xlu1 %228 }
  0x8f   : > { %v838_v51 = vpop.permute.xlu0 %233  ;;  %v840_v52 = vpop.permute.xlu1 %238 }
  0x95   : > { %v842_v53 = vpop.permute.xlu0 %243  ;;  %v845_v54 = vpop.permute.xlu1 %248 }
  0x99   : > { %v254_v55 = vpop.permute.xlu0 %253  ;;  %v259_v0 = vpop.permute.xlu1 %258 }
  0x9d   : > { %v264_v9 = vpop.permute.xlu0 %263  ;;  %v269_v18 = vpop.permute.xlu1 %268 }
  0xa1   : > { %v274_v27 = vpop.permute.xlu0 %273  ;;  %v279_v36 = vpop.permute.xlu1 %278 }
  0xa5   : > { %v284_v45 = vpop.permute.xlu0 %283 }
  0xee   : > { %v413_v56 = vpop.f32.mrb[0].mxu0  ;;  %v461_v57 = vpop.f32.mrb[0].mxu1 }
  0xef   : > { %v414_v58 = vadd.f32 %v413_v56, %v214_v47  ;;  %v462_v59 = vadd.f32 %v461_v57, %v254_v55  ;;  %v415_v60 = vpop.f32.mrb[1].mxu0  ;;  %v463_v61 = vpop.f32.mrb[1].mxu1 }
  0xf0   : > { %v416_v62 = vadd.f32 %v415_v60, %v214_v47  ;;  %v464_v63 = vadd.f32 %v463_v61, %v254_v55  ;;  %v289_v56 = vpop.permute.xlu1 %288 }
  0xf1   : > { %508 = vst [vmem:[%s850_s8] sm:$0xff] %v414_v58  ;;  %524 = vst [vmem:[%s850_s8 + $0x80] sm:$0xff] %v462_v59 }
  0xf2   : > { %509 = vst [vmem:[%s850_s8 + $0x8] sm:$0xff] %v416_v62  ;;  %525 = vst [vmem:[%s850_s8 + $0x88] sm:$0xff] %v464_v63  ;;  %v419_v1 = vpop.f32.mrb[2].mxu0  ;;  %v467_v2 = vpop.f32.mrb[2].mxu1 }
  0xf3   : > { %v420_v3 = vadd.f32 %v419_v1, %v219_v49  ;;  %v468_v4 = vadd.f32 %v467_v2, %v259_v0  ;;  %v421_v5 = vpop.f32.mrb[3].mxu0  ;;  %v469_v6 = vpop.f32.mrb[3].mxu1 }
  0xf4   : > { %v422_v7 = vadd.f32 %v421_v5, %v219_v49  ;;  %v470_v8 = vadd.f32 %v469_v6, %v259_v0 }
  0xf5   : > { %510 = vst [vmem:[%s850_s8 + $0x10] sm:$0xff] %v420_v3  ;;  %526 = vst [vmem:[%s850_s8 + $0x90] sm:$0xff] %v468_v4 }
  0xf6   : > { %511 = vst [vmem:[%s850_s8 + $0x18] sm:$0xff] %v422_v7  ;;  %527 = vst [vmem:[%s850_s8 + $0x98] sm:$0xff] %v470_v8  ;;  %v425_v10 = vpop.f32.mrb[4].mxu0  ;;  %v473_v11 = vpop.f32.mrb[4].mxu1 }
  0xf7   : > { %v426_v12 = vadd.f32 %v425_v10, %v224_v48  ;;  %v474_v13 = vadd.f32 %v473_v11, %v264_v9  ;;  %v427_v14 = vpop.f32.mrb[5].mxu0  ;;  %v475_v15 = vpop.f32.mrb[5].mxu1 }
  0xf8   : > { %v428_v16 = vadd.f32 %v427_v14, %v224_v48  ;;  %v476_v17 = vadd.f32 %v475_v15, %v264_v9 }
  0xf9   : > { %512 = vst [vmem:[%s850_s8 + $0x20] sm:$0xff] %v426_v12  ;;  %528 = vst [vmem:[%s850_s8 + $0xa0] sm:$0xff] %v474_v13 }
  0xfa   : > { %513 = vst [vmem:[%s850_s8 + $0x28] sm:$0xff] %v428_v16  ;;  %529 = vst [vmem:[%s850_s8 + $0xa8] sm:$0xff] %v476_v17  ;;  %v431_v19 = vpop.f32.mrb[6].mxu0  ;;  %v479_v20 = vpop.f32.mrb[6].mxu1 }
  0xfb   : > { %v432_v21 = vadd.f32 %v431_v19, %v229_v50  ;;  %v480_v22 = vadd.f32 %v479_v20, %v269_v18  ;;  %v433_v23 = vpop.f32.mrb[7].mxu0  ;;  %v481_v24 = vpop.f32.mrb[7].mxu1 }
  0xfc   : > { %v434_v25 = vadd.f32 %v433_v23, %v229_v50  ;;  %v482_v26 = vadd.f32 %v481_v24, %v269_v18 }
  0xfd   : > { %514 = vst [vmem:[%s850_s8 + $0x30] sm:$0xff] %v432_v21  ;;  %530 = vst [vmem:[%s850_s8 + $0xb0] sm:$0xff] %v480_v22 }
  0xfe   : > { %515 = vst [vmem:[%s850_s8 + $0x38] sm:$0xff] %v434_v25  ;;  %531 = vst [vmem:[%s850_s8 + $0xb8] sm:$0xff] %v482_v26  ;;  %v437_v28 = vpop.f32.mrb[8].mxu0  ;;  %v485_v29 = vpop.f32.mrb[8].mxu1 }
  0xff   : > { %v438_v30 = vadd.f32 %v437_v28, %v838_v51  ;;  %v486_v31 = vadd.f32 %v485_v29, %v274_v27  ;;  %v439_v32 = vpop.f32.mrb[9].mxu0  ;;  %v487_v33 = vpop.f32.mrb[9].mxu1 }
 0x100   : > { %v440_v34 = vadd.f32 %v439_v32, %v838_v51  ;;  %v488_v35 = vadd.f32 %v487_v33, %v274_v27 }
 0x101   : > { %516 = vst [vmem:[%s850_s8 + $0x40] sm:$0xff] %v438_v30  ;;  %532 = vst [vmem:[%s850_s8 + $0xc0] sm:$0xff] %v486_v31 }
 0x102   : > { %517 = vst [vmem:[%s850_s8 + $0x48] sm:$0xff] %v440_v34  ;;  %533 = vst [vmem:[%s850_s8 + $0xc8] sm:$0xff] %v488_v35  ;;  %v443_v37 = vpop.f32.mrb[10].mxu0  ;;  %v491_v38 = vpop.f32.mrb[10].mxu1 }
 0x103   : > { %v444_v39 = vadd.f32 %v443_v37, %v840_v52  ;;  %v492_v40 = vadd.f32 %v491_v38, %v279_v36  ;;  %v445_v41 = vpop.f32.mrb[11].mxu0  ;;  %v493_v42 = vpop.f32.mrb[11].mxu1 }
 0x104   : > { %v446_v43 = vadd.f32 %v445_v41, %v840_v52  ;;  %v494_v44 = vadd.f32 %v493_v42, %v279_v36 }
 0x105   : > { %518 = vst [vmem:[%s850_s8 + $0x50] sm:$0xff] %v444_v39  ;;  %534 = vst [vmem:[%s850_s8 + $0xd0] sm:$0xff] %v492_v40 }
 0x106   : > { %519 = vst [vmem:[%s850_s8 + $0x58] sm:$0xff] %v446_v43  ;;  %535 = vst [vmem:[%s850_s8 + $0xd8] sm:$0xff] %v494_v44  ;;  %v449_v46 = vpop.f32.mrb[12].mxu0  ;;  %v497_v47 = vpop.f32.mrb[12].mxu1 }
 0x107   : > { %v450_v48 = vadd.f32 %v449_v46, %v842_v53  ;;  %v498_v49 = vadd.f32 %v497_v47, %v284_v45  ;;  %v451_v50 = vpop.f32.mrb[13].mxu0  ;;  %v499_v51 = vpop.f32.mrb[13].mxu1 }
 0x108   : > { %v452_v52 = vadd.f32 %v451_v50, %v842_v53  ;;  %v500_v55 = vadd.f32 %v499_v51, %v284_v45 }
 0x109   : > { %520 = vst [vmem:[%s850_s8 + $0x60] sm:$0xff] %v450_v48  ;;  %536 = vst [vmem:[%s850_s8 + $0xe0] sm:$0xff] %v498_v49 }
 0x10a   : > { %521 = vst [vmem:[%s850_s8 + $0x68] sm:$0xff] %v452_v52  ;;  %537 = vst [vmem:[%s850_s8 + $0xe8] sm:$0xff] %v500_v55  ;;  %v455_v57 = vpop.f32.mrb[14].mxu0  ;;  %v503_v58 = vpop.f32.mrb[14].mxu1 }
 0x10b   : > { %v456_v59 = vadd.f32 %v455_v57, %v845_v54  ;;  %v504_v60 = vadd.f32 %v503_v58, %v289_v56  ;;  %v457_v61 = vpop.f32.mrb[15].mxu0  ;;  %v505_v62 = vpop.f32.mrb[15].mxu1 }
 0x10c   : > { %v458_v63 = vadd.f32 %v457_v61, %v845_v54  ;;  %v506_v0 = vadd.f32 %v505_v62, %v289_v56 }
 0x10d   : > { %522 = vst [vmem:[%s850_s8 + $0x70] sm:$0xff] %v456_v59  ;;  %538 = vst [vmem:[%s850_s8 + $0xf0] sm:$0xff] %v504_v60 }
 0x10e   : > { %523 = vst [vmem:[%s850_s8 + $0x78] sm:$0xff] %v458_v63  ;;  %539 = vst [vmem:[%s850_s8 + $0xf8] sm:$0xff] %v506_v0 }
 0x10f PF: > { %s13_s12 = sadd.s32 1, %s659_s12  }
 0x110   : > { %p10_p4 = scmp.ge.s32.totalorder %s13_s12, 4  }
 0x112   :  { %12 = sbr.rel (!%p10_p4) target bundleno = 1 (0x1), region = 62 }

</bundles_post_ra>
